<compile_context>
chip_gen: v7x
topology: tpu7x:2x2x1
jax: 0.10.0
libtpu: 0.0.40
codegen_flags: <defaults>
</compile_context>

<pallas_src>
import functools

import jax
import jax.numpy as jnp
from jax.experimental import pallas as pl
from jax.experimental.pallas import tpu as pltpu


def _cdiv(a, b):
    return (a + b - 1) // b


def _round_up(a, m):
    return _cdiv(a, m) * m


def _vmem_capacity_bytes():
    try:
        cap = int(pltpu.get_tpu_info().vmem_capacity_bytes)
        if cap > 0:
            return cap
    except Exception:
        pass
    return 64 * 1024 * 1024          # conservative default: fits every TPU generation


def _pick_tile_rows(C, itemsize, budget_bytes, max_rows):
    """Largest row tile (multiple of 8; 1 row = 128 pixels) fitting the VMEM budget."""
    # Per 128-pixel row: double-buffered input blocks + ~f32 in-kernel temporaries.
    per_row = 2 * (C * 128 * itemsize + 128 * 4) + (6 * C + 6) * 128 * 4
    cap = budget_bytes // per_row
    cap = max(8, min(int(cap), max_rows))
    return (cap // 8) * 8


def _dice_kernel(labels_ref, logits_ref, inter_ref, card_ref, *,
                 tiles_per_split, tile_rows, hw_valid, has_tail):
    """Grid = (batch, pixel_split, pixel_tile).

    Block shapes:
      labels_ref:          (1, 1, tile_rows, 128) int32
      logits_ref:          (1, C, tile_rows, 128) native dtype
      inter_ref/card_ref:  (1, 1, C, 8, 128) f32 accumulators (VMEM-resident across
                           the inner "arbitrary" tile axis).
    """
    t = pl.program_id(2)

    @pl.when(t == 0)
    def _init():
        inter_ref[...] = jnp.zeros_like(inter_ref)
        card_ref[...] = jnp.zeros_like(card_ref)

    logits = logits_ref[0]        # (C, Tp, 128) native dtype
    labels = labels_ref[0, 0]     # (Tp, 128) int32
    C, Tp, L = logits.shape

    if Tp % 8 == 0:
        groups = Tp // 8
        h = 8

        def _reduce(x):           # (Tp,128) -> (8,128): tile-aligned reshape + VPU adds
            return jnp.sum(x.reshape(groups, 8, L), axis=0)
    else:                         # tiny images (Tp < 8): keep the raw rows
        h = Tp

        def _reduce(x):
            return x

    def _accumulate(valid):
        x = logits.astype(jnp.float32)
        if valid is not None:
            x = jnp.where(valid[None], x, 0.0)         # clamp garbage before exp
        # softmax over the leading (untiled) class axis -> elementwise VPU/EUP work
        m = jnp.max(x, axis=0, keepdims=True)          # (1, Tp, 128)
        e = jnp.exp(x - m)                             # (C, Tp, 128)
        inv = pl.reciprocal(jnp.sum(e, axis=0, keepdims=True), approx=True)
        probs = e * inv                                # (C, Tp, 128)
        for c in range(C):
            p_c = probs[c]                             # (Tp, 128)
            eq_c = labels == c
            if valid is not None:
                p_c = jnp.where(valid, p_c, 0.0)
                eq_c = jnp.logical_and(eq_c, valid)
            one_c = eq_c.astype(jnp.float32)
            inter_t = jnp.where(eq_c, p_c, 0.0)        # probs * onehot without a mul
            card_t = p_c + one_c
            iv = _reduce(inter_t)
            cv = _reduce(card_t)
            if h == 8:
                inter_ref[0, 0, c] += iv
                card_ref[0, 0, c] += cv
            else:
                inter_ref[0, 0, c, :h, :] += iv
                card_ref[0, 0, c, :h, :] += cv

    if has_tail:
        p = pl.program_id(1)
        start_row = (p * tiles_per_split + t) * tile_rows
        is_tail = (start_row + tile_rows) * 128 > hw_valid

        @pl.when(is_tail)
        def _tail():
            pix = (start_row * 128
                   + jax.lax.broadcasted_iota(jnp.int32, (Tp, L), 0) * 128
                   + jax.lax.broadcasted_iota(jnp.int32, (Tp, L), 1))
            _accumulate(pix < hw_valid)

        @pl.when(jnp.logical_not(is_tail))
        def _interior():
            _accumulate(None)
    else:
        _accumulate(None)


def dice_loss(logits, true, eps=1e-7, max_tile_rows=2048):
    """logits: [N, C, H, W]; true: [N, 1, H, W] integer labels. Returns scalar f32."""
    N, C, H, W = logits.shape
    if C == 1:
        # TODO(synk): binary (num_classes==1) sigmoid branch not implemented in Pallas.
        raise NotImplementedError("binary (num_classes==1) branch not implemented")

    HW = H * W
    hw128 = _round_up(HW, 128)

    logits3 = logits.reshape(N, C, HW)
    labels3 = true.reshape(N, 1, HW).astype(jnp.int32)
    if hw128 != HW:
        # TODO(synk): rare H*W % 128 != 0 layout costs one extra HBM copy of the
        # logits; padded pixels are masked out in-kernel via the global pixel index.
        logits3 = jnp.pad(logits3, ((0, 0), (0, 0), (0, hw128 - HW)))
        labels3 = jnp.pad(labels3, ((0, 0), (0, 0), (0, hw128 - HW)))
    R = hw128 // 128
    logits4 = logits3.reshape(N, C, R, 128)     # layout-preserving (free) reshape
    labels4 = labels3.reshape(N, 1, R, 128)

    itemsize = jnp.dtype(logits.dtype).itemsize
    vmem_cap = _vmem_capacity_bytes()
    budget = vmem_cap * 3 // 4                  # ~96 MiB on v5e/v6e, ~48 MiB on v7x
    cap_rows = _pick_tile_rows(C, itemsize, budget, max_tile_rows)

    # Split the pixel axis across TensorCores when the batch axis can't (v7x has 2 TCs).
    P = 2 if (N == 1 and R > 8) else 1
    if R < 8:
        tile_rows = R                           # full-extent tile for tiny images
    else:
        tile_rows = min(cap_rows, _round_up(_cdiv(R, P), 8))
        if tile_rows > R:                       # keep block rows <= array rows
            tile_rows = max(8, (R // 8) * 8)
    total_tiles = _cdiv(R, tile_rows)
    T = _cdiv(total_tiles, P)
    overhang = P * T > total_tiles              # odd tile count with P=2
    has_tail = P * T * tile_rows * 128 > HW     # any padded / out-of-bounds pixels

    if overhang:
        def row_block(p, t):
            # clamp duplicate trailing slots to the last real block (their
            # contribution is zeroed in-kernel by the global pixel mask)
            return jnp.minimum(p * T + t, total_tiles - 1)
    else:
        def row_block(p, t):
            return p * T + t

    kernel = functools.partial(
        _dice_kernel,
        tiles_per_split=T, tile_rows=tile_rows, hw_valid=HW, has_tail=has_tail)

    inter, card = pl.pallas_call(
        kernel,
        out_shape=(
            jax.ShapeDtypeStruct((N, P, C, 8, 128), jnp.float32),
            jax.ShapeDtypeStruct((N, P, C, 8, 128), jnp.float32),
        ),
        grid_spec=pltpu.PrefetchScalarGridSpec(
            num_scalar_prefetch=0,
            grid=(N, P, T),
            in_specs=[
                pl.BlockSpec((1, 1, tile_rows, 128),
                             lambda n, p, t: (n, 0, row_block(p, t), 0)),   # labels
                pl.BlockSpec((1, C, tile_rows, 128),
                             lambda n, p, t: (n, 0, row_block(p, t), 0)),   # logits
            ],
            out_specs=(
                pl.BlockSpec((1, 1, C, 8, 128), lambda n, p, t: (n, p, 0, 0, 0)),
                pl.BlockSpec((1, 1, C, 8, 128), lambda n, p, t: (n, p, 0, 0, 0)),
            ),
        ),
        compiler_params=pltpu.CompilerParams(
            dimension_semantics=("parallel", "parallel", "arbitrary"),
            vmem_limit_bytes=int(vmem_cap * 7 // 8),
        ),
    )(labels4, logits4)

    # tiny finalize in JAX: fold batch / splits / sublanes / lanes, then 1 - mean dice
    inter_c = jnp.sum(inter, axis=(0, 1, 3, 4))   # (C,)
    card_c = jnp.sum(card, axis=(0, 1, 3, 4))     # (C,)
    dice = jnp.mean(2.0 * inter_c / (card_c + eps))
    return 1.0 - dice


def _dice_loss_ref(logits, true, eps=1e-7):
    """Pure-JAX reference matching the PyTorch module (multi-class path)."""
    C = logits.shape[1]
    lbl = true[:, 0]                                        # (N, H, W)
    true_1_hot = jax.nn.one_hot(lbl, C, dtype=jnp.float32)  # (N, H, W, C)
    true_1_hot = jnp.transpose(true_1_hot, (0, 3, 1, 2))    # (N, C, H, W)
    probas = jax.nn.softmax(logits.astype(jnp.float32), axis=1)
    dims = (0, 2, 3)
    inter = jnp.sum(probas * true_1_hot, axis=dims)
    card = jnp.sum(probas + true_1_hot, axis=dims)
    return 1.0 - jnp.mean(2.0 * inter / (card + eps))


if __name__ == "__main__":
    key = jax.random.PRNGKey(0)
    k1, k2, k3, k4 = jax.random.split(key, 4)

    # Case 1: batch=2, channels=4, 16x16 (tiny-image full-extent tile path).
    logits = jax.random.normal(k1, (2, 4, 16, 16), dtype=jnp.float32)
    labels = jax.random.randint(k2, (2, 1, 16, 16), 0, 4, dtype=jnp.int32)
    loss = jax.block_until_ready(dice_loss(logits, labels))
    ref = jax.block_until_ready(_dice_loss_ref(logits, labels))
    assert jnp.allclose(loss, ref, atol=2e-3, rtol=2e-3), (loss, ref)

    # Case 2: batch=1, channels=3, 64x40 (pixel-split parallel path + masked tail tile).
    logits2 = jax.random.normal(k3, (1, 3, 64, 40), dtype=jnp.float32)
    labels2 = jax.random.randint(k4, (1, 1, 64, 40), 0, 3, dtype=jnp.int32)
    loss2 = jax.block_until_ready(dice_loss(logits2, labels2))
    ref2 = jax.block_until_ready(_dice_loss_ref(logits2, labels2))
    assert jnp.allclose(loss2, ref2, atol=2e-3, rtol=2e-3), (loss2, ref2)

    print("KERNEL_OK")
</pallas_src>

<mosaic_0001>
module attributes {stable_mosaic.version = 11 : i64} {
  func.func @_dice_kernel(%arg0: i32, %arg1: i32, %arg2: i32, %arg3: memref<1x1x2x128xi32, #tpu.memory_space<vmem>>, %arg4: memref<1x4x2x128xf32, #tpu.memory_space<vmem>>, %arg5: memref<1x1x4x8x128xf32, #tpu.memory_space<vmem>>, %arg6: memref<1x1x4x8x128xf32, #tpu.memory_space<vmem>>) attributes {dimension_semantics = [#tpu.dimension_semantics<parallel>, #tpu.dimension_semantics<parallel>, #tpu.dimension_semantics<arbitrary>], iteration_bounds = array<i64: 2, 1, 1>, scalar_prefetch = 0 : i64, scratch_operands = 0 : i64, tpu.core_type = #tpu.core_type<tc>, window_params = [{transform_indices = @transform_0, window_bounds = array<i64: 1, 1, 2, 128>}, {transform_indices = @transform_1, window_bounds = array<i64: 1, 4, 2, 128>}, {transform_indices = @transform_2, window_bounds = array<i64: 1, 1, 4, 8, 128>}, {transform_indices = @transform_3, window_bounds = array<i64: 1, 1, 4, 8, 128>}]} {
    %c0_i32 = arith.constant 0 : i32
    %0 = arith.cmpi eq, %arg2, %c0_i32 : i32
    %1 = arith.extui %0 : i1 to i32
    %c0_i32_0 = arith.constant 0 : i32
    %2 = arith.cmpi ne, %1, %c0_i32_0 : i32
    scf.if %2 {
      %cst_91 = arith.constant 0.000000e+00 : f32
      %101 = vector.broadcast %cst_91 : f32 to vector<1x1x4x8x128xf32>
      %c0_92 = arith.constant 0 : index
      %c0_93 = arith.constant 0 : index
      %c0_94 = arith.constant 0 : index
      %c0_95 = arith.constant 0 : index
      %c0_96 = arith.constant 0 : index
      %102 = vector.load %arg5[%c0_92, %c0_93, %c0_94, %c0_95, %c0_96] : memref<1x1x4x8x128xf32, #tpu.memory_space<vmem>>, vector<1x1x4x8x128xf32>
      tpu.vector_store %arg5[%c0_92, %c0_93, %c0_94, %c0_95, %c0_96], %101 {strides = array<i32>} : memref<1x1x4x8x128xf32, #tpu.memory_space<vmem>>, vector<1x1x4x8x128xf32>,
      %cst_97 = arith.constant 0.000000e+00 : f32
      %103 = vector.broadcast %cst_97 : f32 to vector<1x1x4x8x128xf32>
      %c0_98 = arith.constant 0 : index
      %c0_99 = arith.constant 0 : index
      %c0_100 = arith.constant 0 : index
      %c0_101 = arith.constant 0 : index
      %c0_102 = arith.constant 0 : index
      %104 = vector.load %arg6[%c0_98, %c0_99, %c0_100, %c0_101, %c0_102] : memref<1x1x4x8x128xf32, #tpu.memory_space<vmem>>, vector<1x1x4x8x128xf32>
      tpu.vector_store %arg6[%c0_98, %c0_99, %c0_100, %c0_101, %c0_102], %103 {strides = array<i32>} : memref<1x1x4x8x128xf32, #tpu.memory_space<vmem>>, vector<1x1x4x8x128xf32>,
    } else {
    }
    %c0 = arith.constant 0 : index
    %c0_1 = arith.constant 0 : index
    %c0_2 = arith.constant 0 : index
    %c0_3 = arith.constant 0 : index
    %3 = vector.load %arg4[%c0, %c0_1, %c0_2, %c0_3] : memref<1x4x2x128xf32, #tpu.memory_space<vmem>>, vector<1x4x2x128xf32>
    %4 = vector.shape_cast %3 : vector<1x4x2x128xf32> to vector<4x2x128xf32>
    %c0_4 = arith.constant 0 : index
    %c0_5 = arith.constant 0 : index
    %c0_6 = arith.constant 0 : index
    %c0_7 = arith.constant 0 : index
    %5 = vector.load %arg3[%c0_4, %c0_5, %c0_6, %c0_7] : memref<1x1x2x128xi32, #tpu.memory_space<vmem>>, vector<1x1x2x128xi32>
    %6 = vector.shape_cast %5 : vector<1x1x2x128xi32> to vector<2x128xi32>
    %cst = arith.constant dense<0xFF800000> : vector<2x128xf32>
    %7 = vector.multi_reduction <maximumf>, %4, %cst [0] : vector<4x2x128xf32> to vector<2x128xf32>
    %8 = vector.shape_cast %7 : vector<2x128xf32> to vector<1x2x128xf32>
    %9 = vector.broadcast %8 : vector<1x2x128xf32> to vector<4x2x128xf32>
    %10 = arith.subf %4, %9 : vector<4x2x128xf32>
    %11 = math.exp %10 : vector<4x2x128xf32>
    %cst_8 = arith.constant dense<0.000000e+00> : vector<2x128xf32>
    %12 = vector.multi_reduction <add>, %11, %cst_8 [0] : vector<4x2x128xf32> to vector<2x128xf32>
    %13 = vector.shape_cast %12 : vector<2x128xf32> to vector<1x2x128xf32>
    %14 = tpu.reciprocal %13 {approx = true} : vector<1x2x128xf32> -> vector<1x2x128xf32>
    %15 = vector.broadcast %14 : vector<1x2x128xf32> to vector<4x2x128xf32>
    %16 = arith.mulf %11, %15 : vector<4x2x128xf32>
    %17 = vector.extract_strided_slice %16 {offsets = [0, 0, 0], sizes = [1, 2, 128], strides = [1, 1, 1]} : vector<4x2x128xf32> to vector<1x2x128xf32>
    %18 = vector.shape_cast %17 : vector<1x2x128xf32> to vector<2x128xf32>
    %c0_i32_9 = arith.constant 0 : i32
    %19 = vector.broadcast %c0_i32_9 : i32 to vector<2x128xi32>
    %20 = arith.cmpi eq, %6, %19 : vector<2x128xi32>
    %21 = arith.extui %20 : vector<2x128xi1> to vector<2x128xi32>
    %22 = arith.sitofp %21 : vector<2x128xi32> to vector<2x128xf32>
    %cst_10 = arith.constant 0.000000e+00 : f32
    %23 = vector.broadcast %cst_10 : f32 to vector<2x128xf32>
    %24 = arith.select %20, %18, %23 : vector<2x128xi1>, vector<2x128xf32>
    %25 = arith.addf %18, %22 : vector<2x128xf32>
    %c0_11 = arith.constant 0 : index
    %c0_12 = arith.constant 0 : index
    %c0_13 = arith.constant 0 : index
    %c0_14 = arith.constant 0 : index
    %c0_15 = arith.constant 0 : index
    %26 = vector.load %arg5[%c0_11, %c0_12, %c0_13, %c0_14, %c0_15] : memref<1x1x4x8x128xf32, #tpu.memory_space<vmem>>, vector<1x1x1x2x128xf32>
    %27 = vector.shape_cast %26 : vector<1x1x1x2x128xf32> to vector<2x128xf32>
    %28 = arith.addf %27, %24 : vector<2x128xf32>
    %c0_16 = arith.constant 0 : index
    %c0_17 = arith.constant 0 : index
    %c0_18 = arith.constant 0 : index
    %c0_19 = arith.constant 0 : index
    %c0_20 = arith.constant 0 : index
    %29 = vector.load %arg5[%c0_16, %c0_17, %c0_18, %c0_19, %c0_20] : memref<1x1x4x8x128xf32, #tpu.memory_space<vmem>>, vector<1x1x1x2x128xf32>
    %30 = vector.shape_cast %29 : vector<1x1x1x2x128xf32> to vector<2x128xf32>
    %31 = vector.shape_cast %28 : vector<2x128xf32> to vector<1x1x1x2x128xf32>
    tpu.vector_store %arg5[%c0_16, %c0_17, %c0_18, %c0_19, %c0_20], %31 {strides = array<i32>} : memref<1x1x4x8x128xf32, #tpu.memory_space<vmem>>, vector<1x1x1x2x128xf32>,
    %c0_21 = arith.constant 0 : index
    %c0_22 = arith.constant 0 : index
    %c0_23 = arith.constant 0 : index
    %c0_24 = arith.constant 0 : index
    %c0_25 = arith.constant 0 : index
    %32 = vector.load %arg6[%c0_21, %c0_22, %c0_23, %c0_24, %c0_25] : memref<1x1x4x8x128xf32, #tpu.memory_space<vmem>>, vector<1x1x1x2x128xf32>
    %33 = vector.shape_cast %32 : vector<1x1x1x2x128xf32> to vector<2x128xf32>
    %34 = arith.addf %33, %25 : vector<2x128xf32>
    %c0_26 = arith.constant 0 : index
    %c0_27 = arith.constant 0 : index
    %c0_28 = arith.constant 0 : index
    %c0_29 = arith.constant 0 : index
    %c0_30 = arith.constant 0 : index
    %35 = vector.load %arg6[%c0_26, %c0_27, %c0_28, %c0_29, %c0_30] : memref<1x1x4x8x128xf32, #tpu.memory_space<vmem>>, vector<1x1x1x2x128xf32>
    %36 = vector.shape_cast %35 : vector<1x1x1x2x128xf32> to vector<2x128xf32>
    %37 = vector.shape_cast %34 : vector<2x128xf32> to vector<1x1x1x2x128xf32>
    tpu.vector_store %arg6[%c0_26, %c0_27, %c0_28, %c0_29, %c0_30], %37 {strides = array<i32>} : memref<1x1x4x8x128xf32, #tpu.memory_space<vmem>>, vector<1x1x1x2x128xf32>,
    %38 = vector.extract_strided_slice %16 {offsets = [1, 0, 0], sizes = [1, 2, 128], strides = [1, 1, 1]} : vector<4x2x128xf32> to vector<1x2x128xf32>
    %39 = vector.shape_cast %38 : vector<1x2x128xf32> to vector<2x128xf32>
    %c1_i32 = arith.constant 1 : i32
    %40 = vector.broadcast %c1_i32 : i32 to vector<2x128xi32>
    %41 = arith.cmpi eq, %6, %40 : vector<2x128xi32>
    %42 = arith.extui %41 : vector<2x128xi1> to vector<2x128xi32>
    %43 = arith.sitofp %42 : vector<2x128xi32> to vector<2x128xf32>
    %cst_31 = arith.constant 0.000000e+00 : f32
    %44 = vector.broadcast %cst_31 : f32 to vector<2x128xf32>
    %45 = arith.select %41, %39, %44 : vector<2x128xi1>, vector<2x128xf32>
    %46 = arith.addf %39, %43 : vector<2x128xf32>
    %c0_32 = arith.constant 0 : index
    %c0_33 = arith.constant 0 : index
    %c1 = arith.constant 1 : index
    %c0_34 = arith.constant 0 : index
    %c0_35 = arith.constant 0 : index
    %47 = vector.load %arg5[%c0_32, %c0_33, %c1, %c0_34, %c0_35] : memref<1x1x4x8x128xf32, #tpu.memory_space<vmem>>, vector<1x1x1x2x128xf32>
    %48 = vector.shape_cast %47 : vector<1x1x1x2x128xf32> to vector<2x128xf32>
    %49 = arith.addf %48, %45 : vector<2x128xf32>
    %c0_36 = arith.constant 0 : index
    %c0_37 = arith.constant 0 : index
    %c1_38 = arith.constant 1 : index
    %c0_39 = arith.constant 0 : index
    %c0_40 = arith.constant 0 : index
    %50 = vector.load %arg5[%c0_36, %c0_37, %c1_38, %c0_39, %c0_40] : memref<1x1x4x8x128xf32, #tpu.memory_space<vmem>>, vector<1x1x1x2x128xf32>
    %51 = vector.shape_cast %50 : vector<1x1x1x2x128xf32> to vector<2x128xf32>
    %52 = vector.shape_cast %49 : vector<2x128xf32> to vector<1x1x1x2x128xf32>
    tpu.vector_store %arg5[%c0_36, %c0_37, %c1_38, %c0_39, %c0_40], %52 {strides = array<i32>} : memref<1x1x4x8x128xf32, #tpu.memory_space<vmem>>, vector<1x1x1x2x128xf32>,
    %c0_41 = arith.constant 0 : index
    %c0_42 = arith.constant 0 : index
    %c1_43 = arith.constant 1 : index
    %c0_44 = arith.constant 0 : index
    %c0_45 = arith.constant 0 : index
    %53 = vector.load %arg6[%c0_41, %c0_42, %c1_43, %c0_44, %c0_45] : memref<1x1x4x8x128xf32, #tpu.memory_space<vmem>>, vector<1x1x1x2x128xf32>
    %54 = vector.shape_cast %53 : vector<1x1x1x2x128xf32> to vector<2x128xf32>
    %55 = arith.addf %54, %46 : vector<2x128xf32>
    %c0_46 = arith.constant 0 : index
    %c0_47 = arith.constant 0 : index
    %c1_48 = arith.constant 1 : index
    %c0_49 = arith.constant 0 : index
    %c0_50 = arith.constant 0 : index
    %56 = vector.load %arg6[%c0_46, %c0_47, %c1_48, %c0_49, %c0_50] : memref<1x1x4x8x128xf32, #tpu.memory_space<vmem>>, vector<1x1x1x2x128xf32>
    %57 = vector.shape_cast %56 : vector<1x1x1x2x128xf32> to vector<2x128xf32>
    %58 = vector.shape_cast %55 : vector<2x128xf32> to vector<1x1x1x2x128xf32>
    tpu.vector_store %arg6[%c0_46, %c0_47, %c1_48, %c0_49, %c0_50], %58 {strides = array<i32>} : memref<1x1x4x8x128xf32, #tpu.memory_space<vmem>>, vector<1x1x1x2x128xf32>,
    %59 = vector.extract_strided_slice %16 {offsets = [2, 0, 0], sizes = [1, 2, 128], strides = [1, 1, 1]} : vector<4x2x128xf32> to vector<1x2x128xf32>
    %60 = vector.shape_cast %59 : vector<1x2x128xf32> to vector<2x128xf32>
    %c2_i32 = arith.constant 2 : i32
    %61 = vector.broadcast %c2_i32 : i32 to vector<2x128xi32>
    %62 = arith.cmpi eq, %6, %61 : vector<2x128xi32>
    %63 = arith.extui %62 : vector<2x128xi1> to vector<2x128xi32>
    %64 = arith.sitofp %63 : vector<2x128xi32> to vector<2x128xf32>
    %cst_51 = arith.constant 0.000000e+00 : f32
    %65 = vector.broadcast %cst_51 : f32 to vector<2x128xf32>
    %66 = arith.select %62, %60, %65 : vector<2x128xi1>, vector<2x128xf32>
    %67 = arith.addf %60, %64 : vector<2x128xf32>
    %c0_52 = arith.constant 0 : index
    %c0_53 = arith.constant 0 : index
    %c2 = arith.constant 2 : index
    %c0_54 = arith.constant 0 : index
    %c0_55 = arith.constant 0 : index
    %68 = vector.load %arg5[%c0_52, %c0_53, %c2, %c0_54, %c0_55] : memref<1x1x4x8x128xf32, #tpu.memory_space<vmem>>, vector<1x1x1x2x128xf32>
    %69 = vector.shape_cast %68 : vector<1x1x1x2x128xf32> to vector<2x128xf32>
    %70 = arith.addf %69, %66 : vector<2x128xf32>
    %c0_56 = arith.constant 0 : index
    %c0_57 = arith.constant 0 : index
    %c2_58 = arith.constant 2 : index
    %c0_59 = arith.constant 0 : index
    %c0_60 = arith.constant 0 : index
    %71 = vector.load %arg5[%c0_56, %c0_57, %c2_58, %c0_59, %c0_60] : memref<1x1x4x8x128xf32, #tpu.memory_space<vmem>>, vector<1x1x1x2x128xf32>
    %72 = vector.shape_cast %71 : vector<1x1x1x2x128xf32> to vector<2x128xf32>
    %73 = vector.shape_cast %70 : vector<2x128xf32> to vector<1x1x1x2x128xf32>
    tpu.vector_store %arg5[%c0_56, %c0_57, %c2_58, %c0_59, %c0_60], %73 {strides = array<i32>} : memref<1x1x4x8x128xf32, #tpu.memory_space<vmem>>, vector<1x1x1x2x128xf32>,
    %c0_61 = arith.constant 0 : index
    %c0_62 = arith.constant 0 : index
    %c2_63 = arith.constant 2 : index
    %c0_64 = arith.constant 0 : index
    %c0_65 = arith.constant 0 : index
    %74 = vector.load %arg6[%c0_61, %c0_62, %c2_63, %c0_64, %c0_65] : memref<1x1x4x8x128xf32, #tpu.memory_space<vmem>>, vector<1x1x1x2x128xf32>
    %75 = vector.shape_cast %74 : vector<1x1x1x2x128xf32> to vector<2x128xf32>
    %76 = arith.addf %75, %67 : vector<2x128xf32>
    %c0_66 = arith.constant 0 : index
    %c0_67 = arith.constant 0 : index
    %c2_68 = arith.constant 2 : index
    %c0_69 = arith.constant 0 : index
    %c0_70 = arith.constant 0 : index
    %77 = vector.load %arg6[%c0_66, %c0_67, %c2_68, %c0_69, %c0_70] : memref<1x1x4x8x128xf32, #tpu.memory_space<vmem>>, vector<1x1x1x2x128xf32>
    %78 = vector.shape_cast %77 : vector<1x1x1x2x128xf32> to vector<2x128xf32>
    %79 = vector.shape_cast %76 : vector<2x128xf32> to vector<1x1x1x2x128xf32>
    tpu.vector_store %arg6[%c0_66, %c0_67, %c2_68, %c0_69, %c0_70], %79 {strides = array<i32>} : memref<1x1x4x8x128xf32, #tpu.memory_space<vmem>>, vector<1x1x1x2x128xf32>,
    %80 = vector.extract_strided_slice %16 {offsets = [3, 0, 0], sizes = [1, 2, 128], strides = [1, 1, 1]} : vector<4x2x128xf32> to vector<1x2x128xf32>
    %81 = vector.shape_cast %80 : vector<1x2x128xf32> to vector<2x128xf32>
    %c3_i32 = arith.constant 3 : i32
    %82 = vector.broadcast %c3_i32 : i32 to vector<2x128xi32>
    %83 = arith.cmpi eq, %6, %82 : vector<2x128xi32>
    %84 = arith.extui %83 : vector<2x128xi1> to vector<2x128xi32>
    %85 = arith.sitofp %84 : vector<2x128xi32> to vector<2x128xf32>
    %cst_71 = arith.constant 0.000000e+00 : f32
    %86 = vector.broadcast %cst_71 : f32 to vector<2x128xf32>
    %87 = arith.select %83, %81, %86 : vector<2x128xi1>, vector<2x128xf32>
    %88 = arith.addf %81, %85 : vector<2x128xf32>
    %c0_72 = arith.constant 0 : index
    %c0_73 = arith.constant 0 : index
    %c3 = arith.constant 3 : index
    %c0_74 = arith.constant 0 : index
    %c0_75 = arith.constant 0 : index
    %89 = vector.load %arg5[%c0_72, %c0_73, %c3, %c0_74, %c0_75] : memref<1x1x4x8x128xf32, #tpu.memory_space<vmem>>, vector<1x1x1x2x128xf32>
    %90 = vector.shape_cast %89 : vector<1x1x1x2x128xf32> to vector<2x128xf32>
    %91 = arith.addf %90, %87 : vector<2x128xf32>
    %c0_76 = arith.constant 0 : index
    %c0_77 = arith.constant 0 : index
    %c3_78 = arith.constant 3 : index
    %c0_79 = arith.constant 0 : index
    %c0_80 = arith.constant 0 : index
    %92 = vector.load %arg5[%c0_76, %c0_77, %c3_78, %c0_79, %c0_80] : memref<1x1x4x8x128xf32, #tpu.memory_space<vmem>>, vector<1x1x1x2x128xf32>
    %93 = vector.shape_cast %92 : vector<1x1x1x2x128xf32> to vector<2x128xf32>
    %94 = vector.shape_cast %91 : vector<2x128xf32> to vector<1x1x1x2x128xf32>
    tpu.vector_store %arg5[%c0_76, %c0_77, %c3_78, %c0_79, %c0_80], %94 {strides = array<i32>} : memref<1x1x4x8x128xf32, #tpu.memory_space<vmem>>, vector<1x1x1x2x128xf32>,
    %c0_81 = arith.constant 0 : index
    %c0_82 = arith.constant 0 : index
    %c3_83 = arith.constant 3 : index
    %c0_84 = arith.constant 0 : index
    %c0_85 = arith.constant 0 : index
    %95 = vector.load %arg6[%c0_81, %c0_82, %c3_83, %c0_84, %c0_85] : memref<1x1x4x8x128xf32, #tpu.memory_space<vmem>>, vector<1x1x1x2x128xf32>
    %96 = vector.shape_cast %95 : vector<1x1x1x2x128xf32> to vector<2x128xf32>
    %97 = arith.addf %96, %88 : vector<2x128xf32>
    %c0_86 = arith.constant 0 : index
    %c0_87 = arith.constant 0 : index
    %c3_88 = arith.constant 3 : index
    %c0_89 = arith.constant 0 : index
    %c0_90 = arith.constant 0 : index
    %98 = vector.load %arg6[%c0_86, %c0_87, %c3_88, %c0_89, %c0_90] : memref<1x1x4x8x128xf32, #tpu.memory_space<vmem>>, vector<1x1x1x2x128xf32>
    %99 = vector.shape_cast %98 : vector<1x1x1x2x128xf32> to vector<2x128xf32>
    %100 = vector.shape_cast %97 : vector<2x128xf32> to vector<1x1x1x2x128xf32>
    tpu.vector_store %arg6[%c0_86, %c0_87, %c3_88, %c0_89, %c0_90], %100 {strides = array<i32>} : memref<1x1x4x8x128xf32, #tpu.memory_space<vmem>>, vector<1x1x1x2x128xf32>,
    return
  }
  func.func @transform_0(%arg0: i32, %arg1: i32, %arg2: i32) -> (i32, i32, i32, i32) {
    %c1_i32 = arith.constant 1 : i32
    %0 = arith.muli %arg1, %c1_i32 : i32
    %1 = arith.addi %0, %arg2 : i32
    %c0_i32 = arith.constant 0 : i32
    %c0_i32_0 = arith.constant 0 : i32
    %c0_i32_1 = arith.constant 0 : i32
    return %arg0, %c0_i32, %1, %c0_i32_0 : i32, i32, i32, i32
  }
  func.func @transform_1(%arg0: i32, %arg1: i32, %arg2: i32) -> (i32, i32, i32, i32) {
    %c1_i32 = arith.constant 1 : i32
    %0 = arith.muli %arg1, %c1_i32 : i32
    %1 = arith.addi %0, %arg2 : i32
    %c0_i32 = arith.constant 0 : i32
    %c0_i32_0 = arith.constant 0 : i32
    %c0_i32_1 = arith.constant 0 : i32
    return %arg0, %c0_i32, %1, %c0_i32_0 : i32, i32, i32, i32
  }
  func.func @transform_2(%arg0: i32, %arg1: i32, %arg2: i32) -> (i32, i32, i32, i32, i32) {
    %c0_i32 = arith.constant 0 : i32
    %c0_i32_0 = arith.constant 0 : i32
    %c0_i32_1 = arith.constant 0 : i32
    %c0_i32_2 = arith.constant 0 : i32
    return %arg0, %arg1, %c0_i32, %c0_i32_0, %c0_i32_1 : i32, i32, i32, i32, i32
  }
  func.func @transform_3(%arg0: i32, %arg1: i32, %arg2: i32) -> (i32, i32, i32, i32, i32) {
    %c0_i32 = arith.constant 0 : i32
    %c0_i32_0 = arith.constant 0 : i32
    %c0_i32_1 = arith.constant 0 : i32
    %c0_i32_2 = arith.constant 0 : i32
    return %arg0, %arg1, %c0_i32, %c0_i32_0, %c0_i32_1 : i32, i32, i32, i32, i32
  }
}

</mosaic_0001>

<bundles_post_ra>
// kernel: tpu_custom_call.1
= control target key start
LH: loop header
LB: loop body
LE: loop exit
PB: predicated region body
PF: predicated region fallthrough
CT: control target
= control target key end

     0   :  { %9 = vsyncpa [#allocation3], 0  ;;  %s1227_s0 = inlined_call_operand.hbm [shape: s32[2,1,2,128], index: 0, kind: input, shape index: {}]   ;;  %s1228_s1 = inlined_call_operand.hbm [shape: f32[2,4,2,128], index: 1, kind: input, shape index: {}]   ;;  %s1229_s2 = inlined_call_operand.hbm [shape: f32[2,1,4,8,128], index: 2, kind: output, shape index: {0}]   ;;  %s1230_s3 = inlined_call_operand.hbm [shape: f32[2,1,4,8,128], index: 3, kind: output, shape index: {1}]  }
   0x1   :  { %11 = vsyncpa [#allocation3 + $0x1], 0 }
   0x2   :  { %12 = vsyncpa [#allocation6], 0 }
   0x3   :  { %14 = vsyncpa [#allocation6 + $0x1], 0 }
   0x4   :  { %15 = vsyncpa [#allocation4], 0 }
   0x5   :  { %17 = vsyncpa [#allocation4 + $0x1], 0 }
   0x6   :  { %18 = vsyncpa [#allocation9], 0 }
   0x7   :  { %20 = vsyncpa [#allocation9 + $0x1], 0  ;;  %s899_s12 = smov 0   ;;  %s901_s13 = smov 0  }
   0x8   :  { %s903_s14 = smov 0   ;;  %s905_s15 = smov 0  }
   0x9   :  { %s907_s16 = smov 0   ;;  %s909_s17 = smov 0  }
   0xa LB: > { %s562_s18 = sadd.s32 4294967295, %s868_s17   ;;  %s563_s19 = sadd.s32 4294967294, %s868_s17   ;;  %s868_s17 = sphi %s909_s17, %s26_s17   ;;  %s864_s16 = sphi %s907_s16, %s1249_s16   ;;  %s860_s15 = sphi %s905_s15, %s1248_s15   ;;  %s856_s14 = sphi %s903_s14, %s1247_s14   ;;  %s852_s13 = sphi %s901_s13, %s1246_s13   ;;  %s848_s12 = sphi %s899_s12, %s1245_s12  }
   0xb   : > { %s45_s20 = sadd.s32 1, %s864_s16  ;;  %s56_s21 = sadd.s32 1, %s856_s14 }
   0xc   : > { %p47_p0 = scmp.ge.s32.totalorder %s45_s20, 2  ;;  %p63_p1 = scmp.ne.s32.totalorder %s856_s14, %s852_s13 }
   0xd   : > { %p64_p2 = scmp.eq.s32.totalorder %s868_s17, 0  ;;  %p69_p3 = scmp.ne.s32.totalorder %s852_s13, %s848_s12 }
   0xe   : > { %s1251_s20 = smov (%p47_p0, %s45_s20), 0  ;;  %p70_p5 = scmp.eq.s32.totalorder %s562_s18, 0 }
   0xf   : > { %p940_p4 = por %p64_p2, %p63_p1  ;;  %s51_s23 = ssub.s32 %s864_s16, %s1251_s20 }
  0x10   : > { %p125_p6 = scmp.eq.s32.totalorder %s562_s18, 1  ;;  %p54_p7 = scmp.eq.s32.totalorder %s51_s23, 0 }
  0x11   : > { %p946_p8 = por %p70_p5, %p69_p3  ;;  %p131_p10 = scmp.eq.s32.totalorder %s563_s19, 1 }
  0x12   : > { %p950_p9 = por %p125_p6, %p63_p1  ;;  %p625_p13 = scmp.lt.s32.totalorder %s868_s17, 2 }
  0x13   : > { %s1234_s24 = scalar_select %p946_p8, 1, 0 }
  0x14   : > { %s1235_s25 = scalar_select %p950_p9, 1, 0 }
  0x15   : > { %s955_s26 = scalar_select %p54_p7, %s856_s14, %s56_s21  }
  0x16   : > { %p957_p11 = por %p131_p10, %p69_p3  ;;  %s964_s28 = sand.u32 1, %s856_s14  }
  0x17   : > { %s566_s29 = sshll.u32 %s964_s28, 1  ;;  %s567_s30 = sshll.u32 %s864_s16, 5 }
  0x18   : > { %s1236_s27 = scalar_select %p957_p11, 1, 0 }
  0x19   : > { %s971_s6 = scalar_lea.hbm %s1227_s0, %s567_s30  ;;  %s183_s7 = scalar_lea.vmem [#allocation2], %s566_s29 }
  0x1a   : > { %s192_s8 = sshll.u32 %s183_s7, 4  ;;  %p977_p0 = pnand %p625_p13, %p940_p4  ;;  %s973_s8 = int_to_ptr.vmem [resolvable:$true] %s192_s8 }
  0x1b   : > { %s180_s10 = scalar_lea.sflag [#allocation3], %s964_s28  ;;  %s690_s11 = scalar_lea.hbm %s971_s6, 32 }
  0x1c   : > { %p691_p3 = scmp.ne.s32.totalorder %s971_s6, %s690_s11  ;;  %p692_p5 = pneg %p977_p0 }
  0x1d   : > { %s695_s21 = scalar_lea.hbm %s1227_s0, 64  ;;  %p696_p4 = scmp.lt.u32.totalorder %s971_s6, %s1227_s0 }
  0x1e   : > { %p693_p6 = pnand %p692_p5, %p691_p3  ;;  %p697_p10 = scmp.lt.u32.totalorder %s695_s21, %s690_s11 }
  0x1f   : > { %p699_p12 = scmp.lt.u32.totalorder %s690_s11, %s971_s6 }
  0x20   : > { %p694_p7 = pneg %p693_p6  ;;  %p698_p13 = por %p697_p10, %p696_p4 }
  0x22   : > { %p700_p1 = por %p699_p12, %p698_p13 }
  0x24   : > { %p701_p2 = pnand %p700_p1, %p694_p7 }
  0x26   : > { %704 = shalt.err (!%p701_p2)
}
  0x27   : > { %s705_s29 = scalar_lea.vmem %s973_s8, 32  ;;  %s870_s30 = smov [#allocation2]  }
  0x28   : > { %p706_p3 = scmp.ne.s32.totalorder %s973_s8, %s705_s29  ;;  %s710_s4 = sshll.u32 %s870_s30, 4  ;;  %s711_s4 = int_to_ptr.vmem [resolvable:$false] %s710_s4 }
  0x29   : > { %s712_s5 = scalar_lea.vmem %s711_s4, 64  ;;  %p713_p9 = scmp.lt.s32.totalorder %s973_s8, %s711_s4 }
  0x2a   : > { %p708_p6 = pnand %p706_p3, %p692_p5  ;;  %p714_p4 = scmp.lt.s32.totalorder %s712_s5, %s705_s29 }
  0x2c   : > { %p709_p11 = pneg %p708_p6  ;;  %p715_p10 = por %p714_p4, %p713_p9 }
  0x2e   : > { %p716_p12 = pnand %p715_p10, %p709_p11 }
  0x30   : > { %719 = shalt.err (!%p716_p12)
}
  0x31   : > { %614 = dma.hbm_to_vmem [thread:$0]  (!%p977_p0), %s971_s6, 32, %s973_s8, %s180_s10  }
  0x32   : > { %p1238_p1 = scmp.lt.s32.totalorder %s868_s17, 3  ;;  %p1239_p2 = scmp.ge.s32.totalorder %s868_s17, 1 }
  0x33   : > { %s568_s11 = sshll.u32 %s964_s28, 3  ;;  %s600_s18 = sshll.u32 %s864_s16, 7 }
  0x34   : > { %p1013_p7 = pnand %p1239_p2, %p1238_p1  ;;  %s1022_s22 = scalar_lea.hbm %s1228_s1, %s600_s18 }
  0x35   : > { %s203_s23 = scalar_lea.vmem [#allocation5], %s568_s11  ;;  %s200_s6 = scalar_lea.sflag [#allocation6], %s964_s28 }
  0x36   : > { %s212_s29 = sshll.u32 %s203_s23, 4  ;;  %s720_s8 = scalar_lea.hbm %s1022_s22, 128  ;;  %s1024_s29 = int_to_ptr.vmem [resolvable:$true] %s212_s29 }
  0x37   : > { %p721_p9 = scmp.ne.s32.totalorder %s1022_s22, %s720_s8  ;;  %s725_s4 = scalar_lea.hbm %s1228_s1, 256 }
  0x38   : > { %p726_p3 = scmp.lt.u32.totalorder %s1022_s22, %s1228_s1  ;;  %p727_p6 = scmp.lt.u32.totalorder %s725_s4, %s720_s8 }
  0x39   : > { %p723_p11 = pnand %p721_p9, %p692_p5  ;;  %p729_p10 = scmp.lt.u32.totalorder %s720_s8, %s1022_s22 }
  0x3a   : > { %p728_p4 = por %p727_p6, %p726_p3 }
  0x3b   : > { %p724_p13 = pneg %p723_p11 }
  0x3c   : > { %p730_p12 = por %p729_p10, %p728_p4 }
  0x3e   : > { %p731_p1 = pnand %p730_p12, %p724_p13 }
  0x40   : > { %734 = shalt.err (!%p731_p1)
}
  0x41   : > { %s735_s11 = scalar_lea.vmem %s1024_s29, 128  ;;  %s871_s19 = smov [#allocation5]  }
  0x42   : > { %p736_p2 = scmp.ne.s32.totalorder %s1024_s29, %s735_s11  ;;  %s740_s21 = sshll.u32 %s871_s19, 4  ;;  %s741_s21 = int_to_ptr.vmem [resolvable:$false] %s740_s21 }
  0x43   : > { %s742_s23 = scalar_lea.vmem %s741_s21, 256  ;;  %p743_p8 = scmp.lt.s32.totalorder %s1024_s29, %s741_s21 }
  0x44   : > { %p738_p9 = pnand %p736_p2, %p692_p5  ;;  %p744_p3 = scmp.lt.s32.totalorder %s742_s23, %s735_s11 }
  0x46   : > { %p739_p11 = pneg %p738_p9  ;;  %p745_p6 = por %p744_p3, %p743_p8 }
  0x48   : > { %p746_p4 = pnand %p745_p6, %p739_p11 }
  0x4a   : > { %749 = shalt.err (!%p746_p4)
}
  0x4b   : > { %s872_s8 = smov 32   ;;  %s873_s10 = smov 2  }
  0x4c   : > { %617 = dma.hbm_to_vmem [thread:$0]  (!%p977_p0), %s1022_s22, 128, %s1024_s29, %s200_s6, %s872_s8, %s872_s8, %s873_s10  }
  0x4d   : > { %224 = sbr.rel (%p1013_p7) target bundleno = 176 (0xb0), region = 28  ;;  %s1055_s30 = sand.u32 (!%p1013_p7), 1, %s852_s13  }
  0x4e   : > { %s572_s4 = sshll.u32 (!%p1013_p7), %s1055_s30, 1  ;;  %s227_s5 = scalar_lea.sflag (!%p1013_p7), [#allocation3], %s1055_s30 }
  0x4f   : > { %s1059_s18 = scalar_lea.vmem (!%p1013_p7), [#allocation2], %s572_s4  ;;  %p1241_p8 = scmp.ne.s32.totalorder (!%p1013_p7), %s1234_s24, 0 }
  0x54   : > { %831 = dma.done.wait (%p1241_p8), %s227_s5, 32  }
  0x55   : > { %833 = vsyncadd (%p1241_p8), %s227_s5, 4294967264  ;;  %s573_s28 = sshll.u32 %s1055_s30, 3  ;;  %s236_s9 = scalar_lea.sflag [#allocation6], %s1055_s30 }
  0x56   : > { %s239_s7 = scalar_lea.vmem [#allocation5], %s573_s28 }
  0x57   : > { %835 = dma.done.wait (%p1241_p8), %s236_s9, 128  }
  0x58   : > { %837 = vsyncadd (%p1241_p8), %s236_s9, 4294967168  ;;  %s574_s22 = sshll.u32 %s1055_s30, 5  ;;  %v874_v0 = vmov 0.0   ;;  %vm291_vm0 = vcmask 1041408   ;;  %v286_v1 = vld [vmem:[%s239_s7] sm:$0x3] }
  0x59   : > { %s1072_s29 = scalar_lea.vmem [#allocation7], %s574_s22  ;;  %s1082_s6 = scalar_lea.vmem [#allocation8], %s574_s22  ;;  %v287_v2 = vld [vmem:[%s239_s7 + $0x2] sm:$0x3]  ;;  %v288_v3 = vld [vmem:[%s239_s7 + $0x4] sm:$0x3] }
  0x5a   : > { %278 = vst [vmem:[%s1072_s29] sm:$0xff] %v874_v0  ;;  %279 = vst [vmem:[%s1072_s29 + $0x8] sm:$0xff] %v874_v0  ;;  %v289_v4 = vld [vmem:[%s239_s7 + $0x6] sm:$0x3]  ;;  %v292_v5 = vsel %vm291_vm0, %v286_v1, -inf  ;;  %v293_v6 = vsel %vm291_vm0, %v287_v2, -inf  ;;  %v294_v7 = vsel %vm291_vm0, %v288_v3, -inf }
  0x5b   : > { %280 = vst [vmem:[%s1072_s29 + $0x10] sm:$0xff] %v874_v0  ;;  %281 = vst [vmem:[%s1072_s29 + $0x18] sm:$0xff] %v874_v0  ;;  %v295_v8 = vsel %vm291_vm0, %v289_v4, -inf  ;;  %v296_v9 = vmax.f32 %v292_v5, %v293_v6  ;;  %v290_v31 = vld [vmem:[%s1059_s18] sm:$0x3]  ;;  %s601_s24 = sshll.u32 %s860_s15, 9 }
  0x5c   : > { %282 = vst [vmem:[%s1082_s6] sm:$0xff] %v874_v0  ;;  %283 = vst [vmem:[%s1082_s6 + $0x8] sm:$0xff] %v874_v0  ;;  %v297_v10 = vmax.f32 %v294_v7, %v295_v8  ;;  %vm323_vm1 = vcmp.eq.s32.totalorder %v290_v31, 0  ;;  %vm334_vm2 = vcmp.eq.s32.totalorder %v290_v31, 1  ;;  %vm347_vm3 = vcmp.eq.s32.totalorder %v290_v31, 2  ;;  %s394_s11 = sshll.u32 %s1072_s29, 4  ;;  %s1126_s23 = scalar_lea.hbm %s1229_s2, %s601_s24  ;;  %s1130_s11 = int_to_ptr.vmem [resolvable:$true] %s394_s11 }
  0x5d   : > { %284 = vst [vmem:[%s1082_s6 + $0x10] sm:$0xff] %v874_v0  ;;  %285 = vst [vmem:[%s1082_s6 + $0x18] sm:$0xff] %v874_v0  ;;  %vm360_vm4 = vcmp.eq.s32.totalorder %v290_v31, 3  ;;  %v576_v33 = vsel %vm323_vm1, 1.0, %v874_v0  ;;  %v577_v34 = vsel %vm334_vm2, 1.0, %v874_v0  ;;  %v582_v35 = vsel %vm347_vm3, 1.0, %v874_v0  ;;  %s1145_s5 = scalar_lea.hbm %s1230_s3, %s601_s24 }
  0x5e   : > { %v298_v11 = vmax.f32 %v296_v9, %v297_v10  ;;  %v587_v45 = vsel %vm360_vm4, 1.0, %v874_v0  ;;  %s412_s8 = sshll.u32 %s1082_s6, 4  ;;  %s374_s18 = scalar_lea.sflag [#allocation4], %s1055_s30  ;;  %s1147_s8 = int_to_ptr.vmem [resolvable:$true] %s412_s8 }
  0x5f   : > { %s750_s28 = scalar_lea.vmem %s1130_s11, 512  ;;  %p1242_p5 = scmp.ne.s32.totalorder %s1235_s25, 0 }
  0x60   : > { %v299_v12 = vsub.f32 %v286_v1, %v298_v11  ;;  %v300_v13 = vsub.f32 %v287_v2, %v298_v11  ;;  %v301_v14 = vsub.f32 %v288_v3, %v298_v11  ;;  %v302_v15 = vsub.f32 %v289_v4, %v298_v11  ;;  %p751_p0 = scmp.ne.s32.totalorder %s1130_s11, %s750_s28  ;;  %s875_s9 = smov [#allocation7]  }
  0x61   : > { %v328_v37 = vld [vmem:[%s1072_s29] sm:$0x3]  ;;  %v578_v40 = vld [vmem:[%s1072_s29 + $0x8] sm:$0x3]  ;;  %s754_s7 = sshll.u32 %s875_s9, 4  ;;  %s755_s7 = int_to_ptr.vmem [resolvable:$false] %s754_s7 }
  0x62   : > { %v303_v16 = vmul.f32 1.442695, %v299_v12  ;;  %v305_v17 = vmul.f32 1.442695, %v300_v13  ;;  %v307_v18 = vmul.f32 1.442695, %v301_v14  ;;  %p752_p7 = pnand %p751_p0, %p1242_p5  ;;  %p757_p10 = scmp.lt.s32.totalorder %s1130_s11, %s755_s7 }
  0x63   : > { %v309_v19 = vmul.f32 1.442695, %v302_v15  ;;  %v331_v38 = vld [vmem:[%s1082_s6] sm:$0x3]  ;;  %v580_v43 = vld [vmem:[%s1082_s6 + $0x8] sm:$0x3] }
  0x64   : > { %680 = vpow2.f32 %v303_v16  ;;  %v583_v44 = vld [vmem:[%s1072_s29 + $0x10] sm:$0x3]  ;;  %v588_v51 = vld [vmem:[%s1072_s29 + $0x18] sm:$0x3]  ;;  %p753_p13 = pneg %p752_p7  ;;  %s756_s22 = scalar_lea.vmem %s755_s7, 1024 }
  0x65   : > { %682 = vpow2.f32 %v305_v17  ;;  %v585_v50 = vld [vmem:[%s1082_s6 + $0x10] sm:$0x3]  ;;  %v590_v60 = vld [vmem:[%s1082_s6 + $0x18] sm:$0x3]  ;;  %p758_p12 = scmp.lt.s32.totalorder %s756_s22, %s750_s28 }
  0x66   : > { %684 = vpow2.f32 %v307_v18 }
  0x67   : > { %686 = vpow2.f32 %v309_v19  ;;  %p759_p1 = por %p758_p12, %p757_p10 }
  0x69   : > { %p760_p2 = pnand %p759_p1, %p753_p13 }
  0x6e   : > { %v681_v20 = vpop.eup %680 }
  0x6f   : > { %v683_v21 = vpop.eup %682  ;;  %v311_v22 = vsel %vm291_vm0, %v681_v20, 0.0 }
  0x70   : > { %v685_v23 = vpop.eup %684  ;;  %v312_v24 = vsel %vm291_vm0, %v683_v21, 0.0 }
  0x71   : > { %v687_v25 = vpop.eup %686  ;;  %v313_v26 = vadd.f32 %v312_v24, %v311_v22  ;;  %v314_v27 = vsel %vm291_vm0, %v685_v23, 0.0 }
  0x72   : > { %v316_v28 = vsel %vm291_vm0, %v687_v25, 0.0 }
  0x73   : > { %v315_v29 = vadd.f32 %v314_v27, %v313_v26 }
  0x75   : > { %v317_v30 = vadd.f32 %v316_v28, %v315_v29 }
  0x77   : > { %688 = vrcp.f32 %v317_v30 }
  0x81   : > { %v689_v32 = vpop.eup %688 }
  0x82   : > { %v319_v36 = vmul.f32 %v689_v32, %v681_v20  ;;  %v320_v39 = vmul.f32 %v689_v32, %v683_v21  ;;  %v321_v41 = vmul.f32 %v689_v32, %v685_v23  ;;  %v322_v42 = vmul.f32 %v689_v32, %v687_v25 }
  0x84   : > { %v326_v46 = vsel %vm323_vm1, %v319_v36, 0.0  ;;  %v327_v47 = vadd.f32 %v576_v33, %v319_v36  ;;  %v337_v48 = vsel %vm334_vm2, %v320_v39, 0.0  ;;  %v338_v49 = vadd.f32 %v577_v34, %v320_v39 }
  0x85   : > { %v329_v52 = vadd.f32 %v328_v37, %v326_v46  ;;  %v341_v53 = vadd.f32 %v578_v40, %v337_v48  ;;  %v350_v54 = vsel %vm347_vm3, %v321_v41, 0.0  ;;  %v351_v55 = vadd.f32 %v582_v35, %v321_v41 }
  0x86   : > { %v332_v56 = vadd.f32 %v331_v38, %v327_v47  ;;  %v345_v57 = vadd.f32 %v580_v43, %v338_v49  ;;  %v354_v58 = vadd.f32 %v583_v44, %v350_v54  ;;  %v363_v59 = vsel %vm360_vm4, %v322_v42, 0.0 }
  0x87   : > { %330 = vst [vmem:[%s1072_s29] sm:$0x3] %v329_v52  ;;  %579 = vst [vmem:[%s1072_s29 + $0x8] sm:$0x3] %v341_v53  ;;  %v358_v61 = vadd.f32 %v585_v50, %v351_v55  ;;  %v367_v62 = vadd.f32 %v588_v51, %v363_v59  ;;  %v364_v63 = vadd.f32 %v587_v45, %v322_v42 }
  0x88   : > { %333 = vst [vmem:[%s1082_s6] sm:$0x3] %v332_v56  ;;  %581 = vst [vmem:[%s1082_s6 + $0x8] sm:$0x3] %v345_v57 }
  0x89   : > { %584 = vst [vmem:[%s1072_s29 + $0x10] sm:$0x3] %v354_v58  ;;  %586 = vst [vmem:[%s1082_s6 + $0x10] sm:$0x3] %v358_v61  ;;  %v371_v0 = vadd.f32 %v590_v60, %v364_v63 }
  0x8a   : > { %589 = vst [vmem:[%s1072_s29 + $0x18] sm:$0x3] %v367_v62 }
  0x8b   : > { %763 = shalt.err (!%p760_p2)
}
  0x8c   : > { %s764_s15 = scalar_lea.hbm %s1126_s23, 512  ;;  %s768_s19 = scalar_lea.hbm %s1229_s2, 1024 }
  0x8d   : > { %p765_p9 = scmp.ne.s32.totalorder %s1126_s23, %s764_s15  ;;  %p769_p6 = scmp.lt.u32.totalorder %s1126_s23, %s1229_s2 }
  0x8e   : > { %p770_p4 = scmp.lt.u32.totalorder %s768_s19, %s764_s15  ;;  %p772_p0 = scmp.lt.u32.totalorder %s764_s15, %s1126_s23 }
  0x8f   : > { %p766_p11 = pnand %p765_p9, %p1242_p5 }
  0x90   : > { %p771_p8 = por %p770_p4, %p769_p6 }
  0x91   : > { %p767_p3 = pneg %p766_p11 }
  0x92   : > { %p773_p7 = por %p772_p0, %p771_p8 }
  0x94   : > { %p774_p13 = pnand %p773_p7, %p767_p3 }
  0x96   : > { %777 = shalt.err (!%p774_p13)
}
  0x97   : > { %s876_s4 = smov 128   ;;  %s877_s28 = smov 8   ;;  %591 = vst [vmem:[%s1082_s6 + $0x18] sm:$0x3] %v371_v0 }
  0x98   : > { %607 = dma.vmem_to_hbm [thread:$0]  (%p1242_p5), %s1130_s11, 512, %s1126_s23, %s374_s18, %s876_s4, %s876_s4, %s877_s28  }
  0x99   : > { %s379_s9 = scalar_lea.sflag [#allocation9], %s1055_s30  ;;  %s778_s7 = scalar_lea.vmem %s1147_s8, 512 }
  0x9a   : > { %p779_p10 = scmp.ne.s32.totalorder %s1147_s8, %s778_s7  ;;  %s878_s22 = smov [#allocation8]  }
  0x9b   : > { %s782_s15 = sshll.u32 %s878_s22, 4  ;;  %s783_s15 = int_to_ptr.vmem [resolvable:$false] %s782_s15 }
  0x9c   : > { %p780_p12 = pnand %p779_p10, %p1242_p5  ;;  %s784_s29 = scalar_lea.vmem %s783_s15, 1024 }
  0x9d   : > { %p785_p2 = scmp.lt.s32.totalorder %s1147_s8, %s783_s15  ;;  %p786_p9 = scmp.lt.s32.totalorder %s784_s29, %s778_s7 }
  0x9e   : > { %p781_p1 = pneg %p780_p12 }
  0x9f   : > { %p787_p11 = por %p786_p9, %p785_p2 }
  0xa1   : > { %p788_p3 = pnand %p787_p11, %p781_p1 }
  0xa3   : > { %791 = shalt.err (!%p788_p3)
}
  0xa4   : > { %s792_s6 = scalar_lea.hbm %s1145_s5, 512  ;;  %s796_s18 = scalar_lea.hbm %s1230_s3, 1024 }
  0xa5   : > { %p793_p6 = scmp.ne.s32.totalorder %s1145_s5, %s792_s6  ;;  %p797_p0 = scmp.lt.u32.totalorder %s1145_s5, %s1230_s3 }
  0xa6   : > { %p798_p7 = scmp.lt.u32.totalorder %s796_s18, %s792_s6  ;;  %p800_p10 = scmp.lt.u32.totalorder %s792_s6, %s1145_s5 }
  0xa7   : > { %p794_p4 = pnand %p793_p6, %p1242_p5 }
  0xa8   : > { %p799_p13 = por %p798_p7, %p797_p0 }
  0xa9   : > { %p795_p8 = pneg %p794_p4 }
  0xaa   : > { %p801_p12 = por %p800_p10, %p799_p13 }
  0xac   : > { %p802_p1 = pnand %p801_p12, %p795_p8 }
  0xae   : > { %805 = shalt.err (!%p802_p1)
}
  0xaf   : > { %608 = dma.vmem_to_hbm [thread:$0]  (%p1242_p5), %s1147_s8, 512, %s1145_s5, %s379_s9, %s876_s4, %s876_s4, %s877_s28  }
  0xb0 PF: > { %s427_s21 = sand.u32 1, %s848_s12   ;;  %p1243_p2 = scmp.ne.s32.totalorder %s1236_s27, 0 }
  0xb1   : > { %p1244_p9 = scmp.ge.s32.totalorder %s868_s17, 2  ;;  %s428_s10 = scalar_lea.sflag [#allocation4], %s427_s21 }
  0xb3   : > { %p619_p11 = pnand %p1244_p9, %p1243_p2 }
  0xb5   : > { %839 = dma.done.wait (!%p619_p11), %s428_s10, 512  }
  0xb6   : > { %841 = vsyncadd (!%p619_p11), %s428_s10, 4294966784  ;;  %s437_s25 = scalar_lea.sflag [#allocation9], %s427_s21 }
  0xb7   : > { %843 = dma.done.wait (!%p619_p11), %s437_s25, 512  }
  0xb8   : > { %845 = vsyncadd (!%p619_p11), %s437_s25, 4294966784  ;;  %s26_s17 = sadd.s32 1, %s868_s17   ;;  %s1245_s12 = smov %s852_s13 }
  0xb9   : > { %p23_p3 = scmp.ge.s32.totalorder %s26_s17, 4   ;;  %s1246_s13 = smov %s856_s14 }
  0xba   : > { %s1247_s14 = smov %s955_s26  ;;  %s1248_s15 = smov %s864_s16 }
  0xbb   : > { %s1249_s16 = smov %s1251_s20  ;;  %25 = sbr.rel (!%p23_p3) target bundleno = 10 (0xa), region = 113 }
  0xc2   :  { %442 = vsyncpa [#allocation3], 1 }
  0xc3   :  { %444 = vsyncpa [#allocation3 + $0x1], 1 }
  0xc4   :  { %445 = vsyncpa [#allocation6], 1 }
  0xc5   :  { %447 = vsyncpa [#allocation6 + $0x1], 1 }
  0xc6   :  { %448 = vsyncpa [#allocation4], 1 }
  0xc7   :  { %450 = vsyncpa [#allocation4 + $0x1], 1 }
  0xc8   :  { %451 = vsyncpa [#allocation9], 1 }
  0xc9   :  { %453 = vsyncpa [#allocation9 + $0x1], 1 }

</bundles_post_ra>
